<compile_context>
chip_gen: v7x
topology: tpu7x:2x2x1
jax: 0.10.0
libtpu: 0.0.40
codegen_flags: <defaults>
</compile_context>

<pallas_src>
import jax
import jax.numpy as jnp
from jax import lax
from jax.experimental import pallas as pl
from jax.experimental.pallas import tpu as pltpu

SAMPLE_SIZE = 4

_LANE = 128          # TPU lane width
# Packed-row tile for the lane-dense path.  (tile, 128) f32 = 2 MiB per block;
# double-buffered x + out + weight ~= 8.2 MiB -> safe on v5e/v6e/v7x defaults.
# One packed row = 32 logical rows, so each grid step moves 131072 logical rows.
_TILE_PB = 4096
# Straight-line (no-grid) ceiling for the lane-sparse fallback path.  A (B,4)
# f32 array is lane-padded to (B,128) in VMEM, i.e. B*512 B per array; at 8192
# rows x + out ~= 8 MiB, within every generation's scoped-VMEM default.
_SMALL_BATCH = 8192


# ----------------------------------------------------------------------------
# Kernels
# ----------------------------------------------------------------------------
def _packed_matmul_kernel(x_ref, w_ref, o_ref):
    # x_ref: (tile_pb, 128) f32   w_ref: (128, 128) f32 block-diag W^T
    # o_ref: (tile_pb, 128) f32
    o_ref[...] = jnp.dot(
        x_ref[...], w_ref[...], preferred_element_type=jnp.float32
    ).astype(o_ref.dtype)


def _sparse_linear_kernel(x_ref, w_ref, o_ref):
    # x_ref: (B, in) f32   w_ref: (out, in) f32 (PyTorch layout, untransposed)
    # Contract dim 1 of x with dim 1 of w  ->  x @ W.T, f32 accumulation.
    o_ref[...] = lax.dot_general(
        x_ref[...],
        w_ref[...],
        dimension_numbers=(((1,), (1,)), ((), ())),
        preferred_element_type=jnp.float32,
    ).astype(o_ref.dtype)


# ----------------------------------------------------------------------------
# pallas_call wrappers
# ----------------------------------------------------------------------------
def _linear_small(x: jax.Array, weight: jax.Array) -> jax.Array:
    """Straight-line lane-sparse path for tiny/awkward batches (no grid)."""
    B, in_f = x.shape
    out_f = weight.shape[0]
    return pl.pallas_call(
        _sparse_linear_kernel,
        out_shape=jax.ShapeDtypeStruct((B, out_f), jnp.float32),
        in_specs=[
            pl.BlockSpec(memory_space=pltpu.MemorySpace.VMEM),
            pl.BlockSpec(memory_space=pltpu.MemorySpace.VMEM),
        ],
        out_specs=pl.BlockSpec(memory_space=pltpu.MemorySpace.VMEM),
        cost_estimate=pl.CostEstimate(
            flops=2 * B * in_f * out_f,
            transcendentals=0,
            bytes_accessed=4 * (B * in_f + B * out_f + out_f * in_f),
        ),
    )(x, weight)


def _packed_small(xp: jax.Array, w_bd: jax.Array) -> jax.Array:
    """Straight-line lane-dense path: whole packed arrays resident in VMEM."""
    bp, lane_in = xp.shape
    lane_out = w_bd.shape[1]
    return pl.pallas_call(
        _packed_matmul_kernel,
        out_shape=jax.ShapeDtypeStruct((bp, lane_out), jnp.float32),
        in_specs=[
            pl.BlockSpec(memory_space=pltpu.MemorySpace.VMEM),
            pl.BlockSpec(memory_space=pltpu.MemorySpace.VMEM),
        ],
        out_specs=pl.BlockSpec(memory_space=pltpu.MemorySpace.VMEM),
        cost_estimate=pl.CostEstimate(
            flops=2 * bp * lane_in * lane_out,
            transcendentals=0,
            bytes_accessed=4 * (bp * lane_in + bp * lane_out + lane_in * lane_out),
        ),
    )(xp, w_bd)


def _packed_tiled(xp: jax.Array, w_bd: jax.Array, tile_pb: int) -> jax.Array:
    """Lane-dense batch-tiled path; partial trailing block handled by Pallas."""
    bp, lane_in = xp.shape
    lane_out = w_bd.shape[1]
    grid = (pl.cdiv(bp, tile_pb),)  # >= 2 whenever this path is taken
    return pl.pallas_call(
        _packed_matmul_kernel,
        out_shape=jax.ShapeDtypeStruct((bp, lane_out), jnp.float32),
        grid=grid,
        in_specs=[
            pl.BlockSpec((tile_pb, lane_in), lambda i: (i, 0)),
            # Same weight block every step -> stays resident in VMEM.
            pl.BlockSpec((lane_in, lane_out), lambda i: (0, 0)),
        ],
        out_specs=pl.BlockSpec((tile_pb, lane_out), lambda i: (i, 0)),
        compiler_params=pltpu.CompilerParams(
            # Packed batch rows are independent: shard across TensorCores
            # (matters on v7x's 2-TC chips; harmless on single-TC v5e/v6e).
            dimension_semantics=("parallel",),
        ),
        cost_estimate=pl.CostEstimate(
            flops=2 * bp * lane_in * lane_out,
            transcendentals=0,
            bytes_accessed=4 * (bp * lane_in + bp * lane_out + lane_in * lane_out),
        ),
    )(xp, w_bd)


# ----------------------------------------------------------------------------
# Public forward
# ----------------------------------------------------------------------------
def linear_forward(x: jax.Array, weight: jax.Array) -> jax.Array:
    """x: (B, in), weight: (out, in) torch-style  ->  (B, out) = x @ weight.T."""
    B, in_f = x.shape
    out_f, in_f2 = weight.shape
    assert in_f == in_f2
    assert _LANE % in_f == 0, "lane-dense repack assumes in_features divides 128"
    x = x.astype(jnp.float32)
    weight = weight.astype(jnp.float32)

    pack = _LANE // in_f  # logical rows per packed row (= 32 for in_features=4)

    if B % pack != 0 and B <= _SMALL_BATCH:
        # Tiny / awkward batches: no grid, no pad, whole arrays in VMEM.
        return _linear_small(x, weight)

    # Lane-dense path.  reshape (B,in) -> (B/pack, 128) is free (row-major
    # contiguous); a 128x128 block-diagonal W^T makes it a K=N=128 matmul.
    pad = (-B) % pack  # at most pack-1 (= 31) rows; tiny one-off cost
    if pad:
        x = jnp.pad(x, ((0, pad), (0, 0)))
    bp = (B + pad) // pack

    # (pack*in_f, pack*out_f) = (128, 128): 32 copies of W^T on the diagonal.
    w_bd = jnp.kron(jnp.eye(pack, dtype=jnp.float32), weight.T)
    xp = x.reshape(bp, pack * in_f)

    if bp <= _TILE_PB:
        outp = _packed_small(xp, w_bd)
    else:
        outp = _packed_tiled(xp, w_bd, _TILE_PB)

    out = outp.reshape(bp * pack, out_f)
    return out[:B] if pad else out


if __name__ == "__main__":
    key = jax.random.PRNGKey(0)
    kw, kx1, kx2, kx3 = jax.random.split(key, 4)

    # Deterministic "parameter init" mimicking nn.Linear(4, 4, bias=False):
    # weight shape (out_features, in_features), uniform(-1/sqrt(in), 1/sqrt(in)).
    bound = 1.0 / (SAMPLE_SIZE ** 0.5)
    weight = jax.random.uniform(
        kw, (SAMPLE_SIZE, SAMPLE_SIZE), dtype=jnp.float32,
        minval=-bound, maxval=bound,
    )

    def _check(batch, kx):
        x = jax.random.normal(kx, (batch, SAMPLE_SIZE), dtype=jnp.float32)
        out = jax.block_until_ready(linear_forward(x, weight))
        ref = x @ weight.T
        assert out.shape == (batch, SAMPLE_SIZE)
        assert jnp.allclose(out, ref, atol=1e-5, rtol=1e-5)

    # Small, non-multiple-of-32 batch -> lane-sparse straight-line path.
    _check(8, kx1)
    # Small multiple-of-32 batch -> lane-dense (packed) straight-line path.
    _check(96, kx2)
    # Large, non-multiple-of-32 batch -> tiny pad + lane-dense tiled path
    # (grid of 2 with a partial trailing block).
    _check(150000, kx3)

    print("KERNEL_OK")
</pallas_src>

<mosaic_0001>
module attributes {stable_mosaic.version = 11 : i64} {
  func.func @_sparse_linear_kernel(%arg0: memref<8x4xf32, #tpu.memory_space<vmem>>, %arg1: memref<4x4xf32, #tpu.memory_space<vmem>>, %arg2: memref<8x4xf32, #tpu.memory_space<vmem>>) attributes {dimension_semantics = [], scalar_prefetch = 0 : i64, scratch_operands = 0 : i64, tpu.core_type = #tpu.core_type<tc>} {
    %c0 = arith.constant 0 : index
    %c0_0 = arith.constant 0 : index
    %0 = vector.load %arg0[%c0, %c0_0] : memref<8x4xf32, #tpu.memory_space<vmem>>, vector<8x4xf32>
    %c0_1 = arith.constant 0 : index
    %c0_2 = arith.constant 0 : index
    %1 = vector.load %arg1[%c0_1, %c0_2] : memref<4x4xf32, #tpu.memory_space<vmem>>, vector<4x4xf32>
    %cst = arith.constant dense<0.000000e+00> : vector<8x4xf32>
    %2 = tpu.matmul %0, %1, %cst {dimension_numbers = #tpu.dot_dimension_numbers<[1], [1], [0], [0], [0, 0, 1, 0], [], []>} : vector<8x4xf32>, vector<4x4xf32>, vector<8x4xf32> -> vector<8x4xf32>
    %c0_3 = arith.constant 0 : index
    %c0_4 = arith.constant 0 : index
    %3 = vector.load %arg2[%c0_3, %c0_4] : memref<8x4xf32, #tpu.memory_space<vmem>>, vector<8x4xf32>
    tpu.vector_store %arg2[%c0_3, %c0_4], %2 {strides = array<i32>} : memref<8x4xf32, #tpu.memory_space<vmem>>, vector<8x4xf32>,
    return
  }
}

</mosaic_0001>

<bundles_post_ra>
// kernel: tpu_custom_call.1
= control target key start
LH: loop header
LB: loop body
LE: loop exit
PB: predicated region body
PF: predicated region fallthrough
CT: control target
= control target key end

     0   :  { %vm13_vm0 = vcmask 31744   ;;  %v106_v0 = vmov 0.0   ;;  %vm107_vm1 = vmmov 0   ;;  %s132_s1 = inlined_call_operand.vmem [shape: f32[4,4], index: 1, kind: input, shape index: {}]   ;;  %s133_s0 = inlined_call_operand.vmem [shape: f32[8,4], index: 0, kind: input, shape index: {}]   ;;  %s134_s2 = inlined_call_operand.vmem [shape: f32[8,4], index: 2, kind: output, shape index: {}]  }
   0x1   :  { %99 = vmatprep.subr.mxu0 %v106_v0  ;;  %v12_v1 = vld [vmem:[%s132_s1] sm:$0xf]  ;;  %101 = vmatprep.mubr.msk.f32.mxu0 %vm107_vm1, %v106_v0 }
   0x2   :  { %100 = vmatpush3.xpose.msk.msra.mxu0 %vm13_vm0, %v12_v1  ;;  %v11_v2 = vld [vmem:[%s133_s0] sm:$0xff] }
   0x5   :  { %102 = vmatmul.mubr.msk.f32.vlgmr.msra.gmra.mrb[0].mxu0 %vm13_vm0, %v11_v2 }
  0xd8   :  { %v86_v3 = vpop.f32.mrb[0].mxu0 }
  0xd9   :  { %90 = vst.msk [vmem:[%s134_s2] sm:$0xff] %vm13_vm0, %v86_v3  ;;  %v103_v4 = vpop.f32.mrb[1].mxu0 }

</bundles_post_ra>
